<compile_context>
chip_gen: v7x
topology: tpu7x:2x2x1
jax: 0.10.0
libtpu: 0.0.40
codegen_flags: <defaults>
</compile_context>

<pallas_src>
import math
from functools import partial

import jax
import jax.numpy as jnp
from jax.experimental import pallas as pl
from jax.experimental.pallas import tpu as pltpu


def _layernorm(v, gamma, beta, eps=1e-5):
    v = v.astype(jnp.float32)
    mu = jnp.mean(v, axis=-1, keepdims=True)
    var = jnp.mean((v - mu) ** 2, axis=-1, keepdims=True)
    return (v - mu) * jax.lax.rsqrt(var + eps) * gamma + beta


def _transformer_block_kernel(x_ref, mask_ref,
                              g1_ref, b1_ref,
                              wq_ref, wkv_ref,
                              wpo_ref, bpo_ref,
                              g2_ref, b2_ref,
                              wfc_ref, bfc_ref,
                              wp2_ref, bp2_ref,
                              o_ref,
                              kv_scratch,
                              *, n_head, tq):
    qt = pl.program_id(1)
    T, C = x_ref.shape
    H = n_head
    D = C // H
    inv_sqrt_d = 1.0 / math.sqrt(D)
    f32 = jnp.float32

    # ---------------- K/V for the WHOLE sequence: once per batch element ----------
    # kv_scratch persists across the qt grid axis; recomputed when a new batch
    # element starts (qt == 0).
    @pl.when(qt == 0)
    def _():
        xn_full = _layernorm(x_ref[...], g1_ref[0], b1_ref[0])
        kv_scratch[...] = jnp.dot(
            xn_full.astype(wkv_ref.dtype), wkv_ref[...],
            preferred_element_type=f32).astype(kv_scratch.dtype)

    # ---------------- Query-row tile ----------------
    row0 = pl.multiple_of(qt * tq, tq)
    x_q = x_ref[pl.ds(row0, tq), :].astype(f32)                     # (tq, C)
    xn_q = _layernorm(x_q, g1_ref[0], b1_ref[0])

    # Q projection (weights already [in, out]); fold 1/sqrt(D) into Q (cheaper
    # than scaling the (tq, T) scores per head).
    q2d = jnp.dot(xn_q.astype(wq_ref.dtype), wq_ref[...],
                  preferred_element_type=f32) * inv_sqrt_d           # (tq, C)
    q2d = q2d.astype(wq_ref.dtype)

    kv = kv_scratch[...]                                             # (T, 2C)

    # Batch heads along a leading axis -> two batched dot_generals instead of a
    # per-head matmul loop + concatenate of partial results.
    q_h = jnp.stack([q2d[:, h * D:(h + 1) * D] for h in range(H)], axis=0)      # (H,tq,D)
    k_h = jnp.stack([kv[:, h * D:(h + 1) * D] for h in range(H)], axis=0)        # (H,T,D)
    v_h = jnp.stack([kv[:, C + h * D:C + (h + 1) * D] for h in range(H)], axis=0)

    scores = jnp.einsum('hqd,hkd->hqk', q_h, k_h,
                        preferred_element_type=f32)                  # (H, tq, T)

    # Mask processed ONCE for all heads as an additive bias.
    bias = jnp.where(mask_ref[...] > 0.5, 0.0, -1e30).astype(f32)    # (tq, T)
    scores = scores + bias[None, :, :]

    # Softmax (f32 statistics); reciprocal goes to the otherwise-idle EUP slot.
    scores = scores - jnp.max(scores, axis=-1, keepdims=True)
    p = jnp.exp(scores)
    p = p * pl.reciprocal(jnp.sum(p, axis=-1, keepdims=True), approx=True)

    attn_h = jnp.einsum('hqk,hkd->hqd', p.astype(v_h.dtype), v_h,
                        preferred_element_type=f32)                  # (H, tq, D)
    attn = jnp.concatenate([attn_h[h] for h in range(H)], axis=-1)   # (tq, C)

    attn = jnp.dot(attn.astype(wpo_ref.dtype), wpo_ref[...],
                   preferred_element_type=f32) + bpo_ref[0]

    x1 = x_q + attn                                                  # residual 1

    # ---------------- LayerNorm 2 + MLP ----------------
    xn2 = _layernorm(x1, g2_ref[0], b2_ref[0])
    hdd = jnp.dot(xn2.astype(wfc_ref.dtype), wfc_ref[...],
                  preferred_element_type=f32) + bfc_ref[0]
    # exact (erf-based) GELU, matching nn.GELU() default
    hdd = 0.5 * hdd * (1.0 + jax.lax.erf(hdd * (1.0 / math.sqrt(2.0))))
    hdd = jnp.dot(hdd.astype(wp2_ref.dtype), wp2_ref[...],
                  preferred_element_type=f32) + bp2_ref[0]

    o_ref[...] = (x1 + hdd).astype(o_ref.dtype)                      # residual 2


def _pick_row_tile(T):
    for cand in (512, 256, 128, 64, 32, 16, 8):
        if T % cand == 0:
            return cand
    return T  # fall back to full-extent block (allowed by the (8,128) rule)


def transformer_block(x, attn_mask, params, *, n_head, matmul_dtype=None):
    B, T, C = x.shape
    assert C % n_head == 0
    (g1, b1, wqkv, wpo, bpo, g2, b2, wfc, bfc, wp2, bp2) = params

    # MXU input dtype (use jnp.bfloat16 in production; f32 keeps the demo faithful
    # to the PyTorch reference).
    mdt = jnp.dtype(matmul_dtype) if matmul_dtype is not None else x.dtype

    # Pre-transpose weights host-side (free layout plumbing) to [in, out] so the
    # kernel never pays XLU/relayout cost for a weight transpose.
    wqkv_t = wqkv.T.astype(mdt)      # (C, 3C), columns ordered [q | k | v]
    wq_t = wqkv_t[:, :C]             # (C, C)
    wkv_t = wqkv_t[:, C:]            # (C, 2C)
    wpo_t = wpo.T.astype(mdt)        # (C, C)
    wfc_t = wfc.T.astype(mdt)        # (C, 4C)
    wp2_t = wp2.T.astype(mdt)        # (4C, C)

    tq = _pick_row_tile(T)
    nq = T // tq

    kernel = partial(_transformer_block_kernel, n_head=n_head, tq=tq)

    def rep(shape):
        # replicated block (same block for every grid step)
        return pl.BlockSpec(shape, lambda b, qt: tuple(0 for _ in shape))

    # Advisory cost estimate (matmuls + attention + transcendentals).
    flops = int(2 * B * T * C * C * (3 + 1 + 8) + 4 * B * T * T * C)
    transcendentals = int(B * T * (n_head * T + 4 * C))
    weight_bytes = int(sum(w.size * w.dtype.itemsize
                           for w in (wq_t, wkv_t, wpo_t, wfc_t, wp2_t)))
    bytes_accessed = int(4 * (2 * B * T * C + T * T + 10 * C) + weight_bytes)

    # Explicit VMEM budget: weights (+double buffers) + activation tiles, clamped to
    # a v7x-safe 64 MiB.  TODO(synk): per-generation budget (v5e/v6e allow 128 MiB).
    act_bytes = 4 * (T * 3 * C + tq * (n_head * T + 12 * C))
    vmem_limit = int(min(64 * 1024 * 1024,
                         max(32 * 1024 * 1024, 3 * weight_bytes + 6 * act_bytes)))

    return pl.pallas_call(
        kernel,
        out_shape=jax.ShapeDtypeStruct((B, T, C), x.dtype),
        grid_spec=pltpu.PrefetchScalarGridSpec(
            num_scalar_prefetch=0,
            grid=(B, nq),
            in_specs=[
                # x: full sequence, resident across the q-tile axis (fetched once per b)
                pl.BlockSpec((None, T, C), lambda b, qt: (b, 0, 0)),
                # mask rows for this query tile
                pl.BlockSpec((tq, T), lambda b, qt: (qt, 0)),
                rep((1, C)), rep((1, C)),            # ln_1 gamma / beta
                rep((C, C)), rep((C, 2 * C)),        # Wq^T, Wkv^T (c_attn, no bias)
                rep((C, C)), rep((1, C)),            # attn c_proj W^T, b
                rep((1, C)), rep((1, C)),            # ln_2 gamma / beta
                rep((C, 4 * C)), rep((1, 4 * C)),    # mlp c_fc W^T, b
                rep((4 * C, C)), rep((1, C)),        # mlp c_proj W^T, b
            ],
            out_specs=pl.BlockSpec((None, tq, C), lambda b, qt: (b, qt, 0)),
            scratch_shapes=[pltpu.VMEM((T, 2 * C), mdt)],   # persistent K/V per batch
        ),
        compiler_params=pltpu.CompilerParams(
            dimension_semantics=("parallel", "arbitrary"),
            vmem_limit_bytes=vmem_limit),
        cost_estimate=pl.CostEstimate(
            flops=flops, transcendentals=transcendentals,
            bytes_accessed=bytes_accessed),
    )(x, attn_mask, g1, b1, wq_t, wkv_t, wpo_t, bpo, g2, b2,
      wfc_t, bfc, wp2_t, bp2)


def init_params(key, n_embed):
    ks = jax.random.split(key, 8)
    C = n_embed
    scale = 0.02
    g1 = jnp.ones((1, C), jnp.float32)
    b1 = jnp.zeros((1, C), jnp.float32)
    wqkv = scale * jax.random.normal(ks[0], (3 * C, C), jnp.float32)
    wpo = scale * jax.random.normal(ks[1], (C, C), jnp.float32)
    bpo = scale * jax.random.normal(ks[2], (1, C), jnp.float32)
    g2 = jnp.ones((1, C), jnp.float32)
    b2 = jnp.zeros((1, C), jnp.float32)
    wfc = scale * jax.random.normal(ks[3], (4 * C, C), jnp.float32)
    bfc = scale * jax.random.normal(ks[4], (1, 4 * C), jnp.float32)
    wp2 = scale * jax.random.normal(ks[5], (C, 4 * C), jnp.float32)
    bp2 = scale * jax.random.normal(ks[6], (1, C), jnp.float32)
    return (g1, b1, wqkv, wpo, bpo, g2, b2, wfc, bfc, wp2, bp2)


def _reference(x, mask, params, n_head):
    """Pure-JAX re-implementation of the PyTorch TransformerBlock forward."""
    (g1, b1, wqkv, wpo, bpo, g2, b2, wfc, bfc, wp2, bp2) = params
    B, T, C = x.shape
    D = C // n_head

    def ln(v, g, b):
        mu = v.mean(-1, keepdims=True)
        var = ((v - mu) ** 2).mean(-1, keepdims=True)
        return (v - mu) / jnp.sqrt(var + 1e-5) * g + b

    xn = ln(x, g1[0], b1[0])
    qkv = xn @ wqkv.T
    q, k, v = jnp.split(qkv, 3, axis=-1)
    q = q.reshape(B, T, n_head, D).transpose(0, 2, 1, 3)
    k = k.reshape(B, T, n_head, D).transpose(0, 2, 1, 3)
    v = v.reshape(B, T, n_head, D).transpose(0, 2, 1, 3)
    s = (q @ k.transpose(0, 1, 3, 2)) / math.sqrt(D)
    s = jnp.where(mask[None, None] > 0.5, s, -jnp.inf)
    p = jax.nn.softmax(s, axis=-1)
    a = (p @ v).transpose(0, 2, 1, 3).reshape(B, T, C)
    a = a @ wpo.T + bpo[0]
    x1 = x + a
    xn2 = ln(x1, g2[0], b2[0])
    h = xn2 @ wfc.T + bfc[0]
    h = 0.5 * h * (1.0 + jax.lax.erf(h / math.sqrt(2.0)))
    h = h @ wp2.T + bp2[0]
    return x1 + h


if __name__ == "__main__":
    # small config consistent with the module: n_embed=32, n_head=4, B=2, T=8
    B, T, n_embed, n_head = 2, 8, 32, 4

    key = jax.random.PRNGKey(0)
    kx, kp = jax.random.split(key)
    x = jax.random.normal(kx, (B, T, n_embed), jnp.float32)
    params = init_params(kp, n_embed)

    # causal attention mask (1.0 = attend), shared across batch & heads
    causal = jnp.tril(jnp.ones((T, T), jnp.float32))

    out = transformer_block(x, causal, params, n_head=n_head)
    out = jax.block_until_ready(out)
    assert out.shape == (B, T, n_embed)
    assert bool(jnp.all(jnp.isfinite(out)))

    ref = _reference(x, causal, params, n_head)
    assert bool(jnp.allclose(out, ref, rtol=5e-3, atol=5e-3))

    print("KERNEL_OK")
</pallas_src>

<mosaic_0001>
module attributes {stable_mosaic.version = 11 : i64} {
  func.func @_transformer_block_kernel(%arg0: i32, %arg1: i32, %arg2: memref<1x8x32xf32, #tpu.memory_space<vmem>>, %arg3: memref<8x8xf32, #tpu.memory_space<vmem>>, %arg4: memref<1x32xf32, #tpu.memory_space<vmem>>, %arg5: memref<1x32xf32, #tpu.memory_space<vmem>>, %arg6: memref<32x32xf32, #tpu.memory_space<vmem>>, %arg7: memref<32x64xf32, #tpu.memory_space<vmem>>, %arg8: memref<32x32xf32, #tpu.memory_space<vmem>>, %arg9: memref<1x32xf32, #tpu.memory_space<vmem>>, %arg10: memref<1x32xf32, #tpu.memory_space<vmem>>, %arg11: memref<1x32xf32, #tpu.memory_space<vmem>>, %arg12: memref<32x128xf32, #tpu.memory_space<vmem>>, %arg13: memref<1x128xf32, #tpu.memory_space<vmem>>, %arg14: memref<128x32xf32, #tpu.memory_space<vmem>>, %arg15: memref<1x32xf32, #tpu.memory_space<vmem>>, %arg16: memref<1x8x32xf32, #tpu.memory_space<vmem>>, %arg17: memref<8x64xf32, #tpu.memory_space<vmem>>) attributes {dimension_semantics = [#tpu.dimension_semantics<parallel>, #tpu.dimension_semantics<arbitrary>], iteration_bounds = array<i64: 2, 1>, scalar_prefetch = 0 : i64, scratch_operands = 1 : i64, tpu.core_type = #tpu.core_type<tc>, window_params = [{transform_indices = @transform_0, window_bounds = array<i64: 1, 8, 32>}, {transform_indices = @transform_1, window_bounds = array<i64: 8, 8>}, {pipeline_mode = #tpu.pipeline_mode<synchronous>, transform_indices = @transform_2, window_bounds = array<i64: 1, 32>}, {pipeline_mode = #tpu.pipeline_mode<synchronous>, transform_indices = @transform_3, window_bounds = array<i64: 1, 32>}, {pipeline_mode = #tpu.pipeline_mode<synchronous>, transform_indices = @transform_4, window_bounds = array<i64: 32, 32>}, {pipeline_mode = #tpu.pipeline_mode<synchronous>, transform_indices = @transform_5, window_bounds = array<i64: 32, 64>}, {pipeline_mode = #tpu.pipeline_mode<synchronous>, transform_indices = @transform_6, window_bounds = array<i64: 32, 32>}, {pipeline_mode = #tpu.pipeline_mode<synchronous>, transform_indices = @transform_7, window_bounds = array<i64: 1, 32>}, {pipeline_mode = #tpu.pipeline_mode<synchronous>, transform_indices = @transform_8, window_bounds = array<i64: 1, 32>}, {pipeline_mode = #tpu.pipeline_mode<synchronous>, transform_indices = @transform_9, window_bounds = array<i64: 1, 32>}, {pipeline_mode = #tpu.pipeline_mode<synchronous>, transform_indices = @transform_10, window_bounds = array<i64: 32, 128>}, {pipeline_mode = #tpu.pipeline_mode<synchronous>, transform_indices = @transform_11, window_bounds = array<i64: 1, 128>}, {pipeline_mode = #tpu.pipeline_mode<synchronous>, transform_indices = @transform_12, window_bounds = array<i64: 128, 32>}, {pipeline_mode = #tpu.pipeline_mode<synchronous>, transform_indices = @transform_13, window_bounds = array<i64: 1, 32>}, {transform_indices = @transform_14, window_bounds = array<i64: 1, 8, 32>}]} {
    %c0_i32 = arith.constant 0 : i32
    %0 = arith.cmpi eq, %arg1, %c0_i32 : i32
    %1 = arith.extui %0 : i1 to i32
    %c0_i32_0 = arith.constant 0 : i32
    %2 = arith.cmpi ne, %1, %c0_i32_0 : i32
    scf.if %2 {
      %c0_55 = arith.constant 0 : index
      %c0_56 = arith.constant 0 : index
      %c0_57 = arith.constant 0 : index
      %160 = vector.load %arg2[%c0_55, %c0_56, %c0_57] : memref<1x8x32xf32, #tpu.memory_space<vmem>>, vector<1x8x32xf32>
      %161 = vector.shape_cast %160 : vector<1x8x32xf32> to vector<8x32xf32>
      %c0_58 = arith.constant 0 : index
      %c0_59 = arith.constant 0 : index
      %162 = vector.load %arg4[%c0_58, %c0_59] : memref<1x32xf32, #tpu.memory_space<vmem>>, vector<1x32xf32>
      %163 = vector.shape_cast %162 : vector<1x32xf32> to vector<32xf32>
      %c0_60 = arith.constant 0 : index
      %c0_61 = arith.constant 0 : index
      %164 = vector.load %arg5[%c0_60, %c0_61] : memref<1x32xf32, #tpu.memory_space<vmem>>, vector<1x32xf32>
      %165 = vector.shape_cast %164 : vector<1x32xf32> to vector<32xf32>
      %cst_62 = arith.constant dense<0.000000e+00> : vector<8xf32>
      %166 = vector.multi_reduction <add>, %161, %cst_62 [1] : vector<8x32xf32> to vector<8xf32>
      %167 = vector.shape_cast %166 : vector<8xf32> to vector<8x1xf32>
      %cst_63 = arith.constant 3.200000e+01 : f32
      %168 = vector.broadcast %cst_63 : f32 to vector<8x1xf32>
      %169 = arith.divf %167, %168 : vector<8x1xf32>
      %170 = vector.broadcast %169 : vector<8x1xf32> to vector<8x32xf32>
      %171 = arith.subf %161, %170 : vector<8x32xf32>
      %172 = arith.mulf %171, %171 : vector<8x32xf32>
      %cst_64 = arith.constant dense<0.000000e+00> : vector<8xf32>
      %173 = vector.multi_reduction <add>, %172, %cst_64 [1] : vector<8x32xf32> to vector<8xf32>
      %174 = vector.shape_cast %173 : vector<8xf32> to vector<8x1xf32>
      %cst_65 = arith.constant 3.200000e+01 : f32
      %175 = vector.broadcast %cst_65 : f32 to vector<8x1xf32>
      %176 = arith.divf %174, %175 : vector<8x1xf32>
      %177 = vector.broadcast %169 : vector<8x1xf32> to vector<8x32xf32>
      %178 = arith.subf %161, %177 : vector<8x32xf32>
      %cst_66 = arith.constant 9.99999974E-6 : f32
      %179 = vector.broadcast %cst_66 : f32 to vector<8x1xf32>
      %180 = arith.addf %176, %179 : vector<8x1xf32>
      %181 = math.rsqrt %180 : vector<8x1xf32>
      %182 = vector.broadcast %181 : vector<8x1xf32> to vector<8x32xf32>
      %183 = arith.mulf %178, %182 : vector<8x32xf32>
      %184 = vector.shape_cast %163 : vector<32xf32> to vector<1x32xf32>
      %185 = vector.broadcast %184 : vector<1x32xf32> to vector<8x32xf32>
      %186 = arith.mulf %183, %185 : vector<8x32xf32>
      %187 = vector.shape_cast %165 : vector<32xf32> to vector<1x32xf32>
      %188 = vector.broadcast %187 : vector<1x32xf32> to vector<8x32xf32>
      %189 = arith.addf %186, %188 : vector<8x32xf32>
      %c0_67 = arith.constant 0 : index
      %c0_68 = arith.constant 0 : index
      %190 = vector.load %arg7[%c0_67, %c0_68] : memref<32x64xf32, #tpu.memory_space<vmem>>, vector<32x64xf32>
      %cst_69 = arith.constant dense<0.000000e+00> : vector<8x64xf32>
      %191 = tpu.matmul %189, %190, %cst_69 {dimension_numbers = #tpu.dot_dimension_numbers<[1], [0], [0], [1], [0, 0, 1, 1], [], []>} : vector<8x32xf32>, vector<32x64xf32>, vector<8x64xf32> -> vector<8x64xf32>
      %c0_70 = arith.constant 0 : index
      %c0_71 = arith.constant 0 : index
      %192 = vector.load %arg17[%c0_70, %c0_71] : memref<8x64xf32, #tpu.memory_space<vmem>>, vector<8x64xf32>
      tpu.vector_store %arg17[%c0_70, %c0_71], %191 {strides = array<i32>} : memref<8x64xf32, #tpu.memory_space<vmem>>, vector<8x64xf32>,
    } else {
    }
    %c8_i32 = arith.constant 8 : i32
    %3 = arith.muli %arg1, %c8_i32 : i32
    %4 = tpu.assume_multiple %3, 8 : i32
    %c0 = arith.constant 0 : index
    %5 = arith.index_cast %4 : i32 to index
    %c0_1 = arith.constant 0 : index
    %6 = vector.load %arg2[%c0, %5, %c0_1] : memref<1x8x32xf32, #tpu.memory_space<vmem>>, vector<1x8x32xf32>
    %7 = vector.shape_cast %6 : vector<1x8x32xf32> to vector<8x32xf32>
    %c0_2 = arith.constant 0 : index
    %c0_3 = arith.constant 0 : index
    %8 = vector.load %arg4[%c0_2, %c0_3] : memref<1x32xf32, #tpu.memory_space<vmem>>, vector<1x32xf32>
    %9 = vector.shape_cast %8 : vector<1x32xf32> to vector<32xf32>
    %c0_4 = arith.constant 0 : index
    %c0_5 = arith.constant 0 : index
    %10 = vector.load %arg5[%c0_4, %c0_5] : memref<1x32xf32, #tpu.memory_space<vmem>>, vector<1x32xf32>
    %11 = vector.shape_cast %10 : vector<1x32xf32> to vector<32xf32>
    %cst = arith.constant dense<0.000000e+00> : vector<8xf32>
    %12 = vector.multi_reduction <add>, %7, %cst [1] : vector<8x32xf32> to vector<8xf32>
    %13 = vector.shape_cast %12 : vector<8xf32> to vector<8x1xf32>
    %cst_6 = arith.constant 3.200000e+01 : f32
    %14 = vector.broadcast %cst_6 : f32 to vector<8x1xf32>
    %15 = arith.divf %13, %14 : vector<8x1xf32>
    %16 = vector.broadcast %15 : vector<8x1xf32> to vector<8x32xf32>
    %17 = arith.subf %7, %16 : vector<8x32xf32>
    %18 = arith.mulf %17, %17 : vector<8x32xf32>
    %cst_7 = arith.constant dense<0.000000e+00> : vector<8xf32>
    %19 = vector.multi_reduction <add>, %18, %cst_7 [1] : vector<8x32xf32> to vector<8xf32>
    %20 = vector.shape_cast %19 : vector<8xf32> to vector<8x1xf32>
    %cst_8 = arith.constant 3.200000e+01 : f32
    %21 = vector.broadcast %cst_8 : f32 to vector<8x1xf32>
    %22 = arith.divf %20, %21 : vector<8x1xf32>
    %23 = vector.broadcast %15 : vector<8x1xf32> to vector<8x32xf32>
    %24 = arith.subf %7, %23 : vector<8x32xf32>
    %cst_9 = arith.constant 9.99999974E-6 : f32
    %25 = vector.broadcast %cst_9 : f32 to vector<8x1xf32>
    %26 = arith.addf %22, %25 : vector<8x1xf32>
    %27 = math.rsqrt %26 : vector<8x1xf32>
    %28 = vector.broadcast %27 : vector<8x1xf32> to vector<8x32xf32>
    %29 = arith.mulf %24, %28 : vector<8x32xf32>
    %30 = vector.shape_cast %9 : vector<32xf32> to vector<1x32xf32>
    %31 = vector.broadcast %30 : vector<1x32xf32> to vector<8x32xf32>
    %32 = arith.mulf %29, %31 : vector<8x32xf32>
    %33 = vector.shape_cast %11 : vector<32xf32> to vector<1x32xf32>
    %34 = vector.broadcast %33 : vector<1x32xf32> to vector<8x32xf32>
    %35 = arith.addf %32, %34 : vector<8x32xf32>
    %c0_10 = arith.constant 0 : index
    %c0_11 = arith.constant 0 : index
    %36 = vector.load %arg6[%c0_10, %c0_11] : memref<32x32xf32, #tpu.memory_space<vmem>>, vector<32x32xf32>
    %cst_12 = arith.constant dense<0.000000e+00> : vector<8x32xf32>
    %37 = tpu.matmul %35, %36, %cst_12 {dimension_numbers = #tpu.dot_dimension_numbers<[1], [0], [0], [1], [0, 0, 1, 1], [], []>} : vector<8x32xf32>, vector<32x32xf32>, vector<8x32xf32> -> vector<8x32xf32>
    %cst_13 = arith.constant 0.353553385 : f32
    %38 = vector.broadcast %cst_13 : f32 to vector<8x32xf32>
    %39 = arith.mulf %37, %38 : vector<8x32xf32>
    %c0_14 = arith.constant 0 : index
    %c0_15 = arith.constant 0 : index
    %40 = vector.load %arg17[%c0_14, %c0_15] : memref<8x64xf32, #tpu.memory_space<vmem>>, vector<8x64xf32>
    %41 = vector.extract_strided_slice %39 {offsets = [0, 0], sizes = [8, 8], strides = [1, 1]} : vector<8x32xf32> to vector<8x8xf32>
    %42 = vector.extract_strided_slice %39 {offsets = [0, 8], sizes = [8, 8], strides = [1, 1]} : vector<8x32xf32> to vector<8x8xf32>
    %43 = vector.extract_strided_slice %39 {offsets = [0, 16], sizes = [8, 8], strides = [1, 1]} : vector<8x32xf32> to vector<8x8xf32>
    %44 = vector.extract_strided_slice %39 {offsets = [0, 24], sizes = [8, 8], strides = [1, 1]} : vector<8x32xf32> to vector<8x8xf32>
    %45 = vector.shape_cast %41 : vector<8x8xf32> to vector<1x8x8xf32>
    %46 = vector.shape_cast %42 : vector<8x8xf32> to vector<1x8x8xf32>
    %47 = vector.shape_cast %43 : vector<8x8xf32> to vector<1x8x8xf32>
    %48 = vector.shape_cast %44 : vector<8x8xf32> to vector<1x8x8xf32>
    %49 = tpu.concatenate %45, %46, %47, %48 in 0 : vector<1x8x8xf32>, vector<1x8x8xf32>, vector<1x8x8xf32>, vector<1x8x8xf32> -> vector<4x8x8xf32>
    %50 = vector.extract_strided_slice %40 {offsets = [0, 0], sizes = [8, 8], strides = [1, 1]} : vector<8x64xf32> to vector<8x8xf32>
    %51 = vector.extract_strided_slice %40 {offsets = [0, 8], sizes = [8, 8], strides = [1, 1]} : vector<8x64xf32> to vector<8x8xf32>
    %52 = vector.extract_strided_slice %40 {offsets = [0, 16], sizes = [8, 8], strides = [1, 1]} : vector<8x64xf32> to vector<8x8xf32>
    %53 = vector.extract_strided_slice %40 {offsets = [0, 24], sizes = [8, 8], strides = [1, 1]} : vector<8x64xf32> to vector<8x8xf32>
    %54 = vector.shape_cast %50 : vector<8x8xf32> to vector<1x8x8xf32>
    %55 = vector.shape_cast %51 : vector<8x8xf32> to vector<1x8x8xf32>
    %56 = vector.shape_cast %52 : vector<8x8xf32> to vector<1x8x8xf32>
    %57 = vector.shape_cast %53 : vector<8x8xf32> to vector<1x8x8xf32>
    %58 = tpu.concatenate %54, %55, %56, %57 in 0 : vector<1x8x8xf32>, vector<1x8x8xf32>, vector<1x8x8xf32>, vector<1x8x8xf32> -> vector<4x8x8xf32>
    %59 = vector.extract_strided_slice %40 {offsets = [0, 32], sizes = [8, 8], strides = [1, 1]} : vector<8x64xf32> to vector<8x8xf32>
    %60 = vector.extract_strided_slice %40 {offsets = [0, 40], sizes = [8, 8], strides = [1, 1]} : vector<8x64xf32> to vector<8x8xf32>
    %61 = vector.extract_strided_slice %40 {offsets = [0, 48], sizes = [8, 8], strides = [1, 1]} : vector<8x64xf32> to vector<8x8xf32>
    %62 = vector.extract_strided_slice %40 {offsets = [0, 56], sizes = [8, 8], strides = [1, 1]} : vector<8x64xf32> to vector<8x8xf32>
    %63 = vector.shape_cast %59 : vector<8x8xf32> to vector<1x8x8xf32>
    %64 = vector.shape_cast %60 : vector<8x8xf32> to vector<1x8x8xf32>
    %65 = vector.shape_cast %61 : vector<8x8xf32> to vector<1x8x8xf32>
    %66 = vector.shape_cast %62 : vector<8x8xf32> to vector<1x8x8xf32>
    %67 = tpu.concatenate %63, %64, %65, %66 in 0 : vector<1x8x8xf32>, vector<1x8x8xf32>, vector<1x8x8xf32>, vector<1x8x8xf32> -> vector<4x8x8xf32>
    "tpu.trace_start"() <{level = 10 : i32, message = "hqd,hkd->hqk"}> : () -> ()
    %cst_16 = arith.constant dense<0.000000e+00> : vector<4x8x8xf32>
    %68 = tpu.matmul %49, %58, %cst_16 {dimension_numbers = #tpu.dot_dimension_numbers<[2], [2], [1], [1], [0, 0, 0, 1, 1, 1], [0], [0]>} : vector<4x8x8xf32>, vector<4x8x8xf32>, vector<4x8x8xf32> -> vector<4x8x8xf32>
    "tpu.trace_stop"() : () -> ()
    %c0_17 = arith.constant 0 : index
    %c0_18 = arith.constant 0 : index
    %69 = vector.load %arg3[%c0_17, %c0_18] : memref<8x8xf32, #tpu.memory_space<vmem>>, vector<8x8xf32>
    %cst_19 = arith.constant 5.000000e-01 : f32
    %70 = vector.broadcast %cst_19 : f32 to vector<8x8xf32>
    %71 = arith.cmpf ogt, %69, %70 : vector<8x8xf32>
    %cst_20 = arith.constant 0.000000e+00 : f32
    %cst_21 = arith.constant -1.000000e+30 : f32
    %72 = vector.broadcast %cst_20 : f32 to vector<8x8xf32>
    %73 = vector.broadcast %cst_21 : f32 to vector<8x8xf32>
    %74 = arith.select %71, %72, %73 : vector<8x8xi1>, vector<8x8xf32>
    %75 = vector.shape_cast %74 : vector<8x8xf32> to vector<1x8x8xf32>
    %76 = vector.broadcast %75 : vector<1x8x8xf32> to vector<4x8x8xf32>
    %77 = arith.addf %68, %76 : vector<4x8x8xf32>
    %cst_22 = arith.constant dense<0xFF800000> : vector<4x8xf32>
    %78 = vector.multi_reduction <maximumf>, %77, %cst_22 [2] : vector<4x8x8xf32> to vector<4x8xf32>
    %79 = vector.shape_cast %78 : vector<4x8xf32> to vector<4x8x1xf32>
    %80 = vector.broadcast %79 : vector<4x8x1xf32> to vector<4x8x8xf32>
    %81 = arith.subf %77, %80 : vector<4x8x8xf32>
    %82 = math.exp %81 : vector<4x8x8xf32>
    %cst_23 = arith.constant dense<0.000000e+00> : vector<4x8xf32>
    %83 = vector.multi_reduction <add>, %82, %cst_23 [2] : vector<4x8x8xf32> to vector<4x8xf32>
    %84 = vector.shape_cast %83 : vector<4x8xf32> to vector<4x8x1xf32>
    %85 = tpu.reciprocal %84 {approx = true} : vector<4x8x1xf32> -> vector<4x8x1xf32>
    %86 = vector.broadcast %85 : vector<4x8x1xf32> to vector<4x8x8xf32>
    %87 = arith.mulf %82, %86 : vector<4x8x8xf32>
    "tpu.trace_start"() <{level = 10 : i32, message = "hqk,hkd->hqd"}> : () -> ()
    %cst_24 = arith.constant dense<0.000000e+00> : vector<4x8x8xf32>
    %88 = tpu.matmul %87, %67, %cst_24 {dimension_numbers = #tpu.dot_dimension_numbers<[2], [1], [1], [2], [0, 0, 0, 1, 1, 2], [0], [0]>} : vector<4x8x8xf32>, vector<4x8x8xf32>, vector<4x8x8xf32> -> vector<4x8x8xf32>
    "tpu.trace_stop"() : () -> ()
    %89 = vector.extract_strided_slice %88 {offsets = [0, 0, 0], sizes = [1, 8, 8], strides = [1, 1, 1]} : vector<4x8x8xf32> to vector<1x8x8xf32>
    %90 = vector.shape_cast %89 : vector<1x8x8xf32> to vector<8x8xf32>
    %91 = vector.extract_strided_slice %88 {offsets = [1, 0, 0], sizes = [1, 8, 8], strides = [1, 1, 1]} : vector<4x8x8xf32> to vector<1x8x8xf32>
    %92 = vector.shape_cast %91 : vector<1x8x8xf32> to vector<8x8xf32>
    %93 = vector.extract_strided_slice %88 {offsets = [2, 0, 0], sizes = [1, 8, 8], strides = [1, 1, 1]} : vector<4x8x8xf32> to vector<1x8x8xf32>
    %94 = vector.shape_cast %93 : vector<1x8x8xf32> to vector<8x8xf32>
    %95 = vector.extract_strided_slice %88 {offsets = [3, 0, 0], sizes = [1, 8, 8], strides = [1, 1, 1]} : vector<4x8x8xf32> to vector<1x8x8xf32>
    %96 = vector.shape_cast %95 : vector<1x8x8xf32> to vector<8x8xf32>
    %97 = tpu.concatenate %90, %92, %94, %96 in 1 : vector<8x8xf32>, vector<8x8xf32>, vector<8x8xf32>, vector<8x8xf32> -> vector<8x32xf32>
    %c0_25 = arith.constant 0 : index
    %c0_26 = arith.constant 0 : index
    %98 = vector.load %arg8[%c0_25, %c0_26] : memref<32x32xf32, #tpu.memory_space<vmem>>, vector<32x32xf32>
    %cst_27 = arith.constant dense<0.000000e+00> : vector<8x32xf32>
    %99 = tpu.matmul %97, %98, %cst_27 {dimension_numbers = #tpu.dot_dimension_numbers<[1], [0], [0], [1], [0, 0, 1, 1], [], []>} : vector<8x32xf32>, vector<32x32xf32>, vector<8x32xf32> -> vector<8x32xf32>
    %c0_28 = arith.constant 0 : index
    %c0_29 = arith.constant 0 : index
    %100 = vector.load %arg9[%c0_28, %c0_29] : memref<1x32xf32, #tpu.memory_space<vmem>>, vector<1x32xf32>
    %101 = vector.shape_cast %100 : vector<1x32xf32> to vector<32xf32>
    %102 = vector.shape_cast %101 : vector<32xf32> to vector<1x32xf32>
    %103 = vector.broadcast %102 : vector<1x32xf32> to vector<8x32xf32>
    %104 = arith.addf %99, %103 : vector<8x32xf32>
    %105 = arith.addf %7, %104 : vector<8x32xf32>
    %c0_30 = arith.constant 0 : index
    %c0_31 = arith.constant 0 : index
    %106 = vector.load %arg10[%c0_30, %c0_31] : memref<1x32xf32, #tpu.memory_space<vmem>>, vector<1x32xf32>
    %107 = vector.shape_cast %106 : vector<1x32xf32> to vector<32xf32>
    %c0_32 = arith.constant 0 : index
    %c0_33 = arith.constant 0 : index
    %108 = vector.load %arg11[%c0_32, %c0_33] : memref<1x32xf32, #tpu.memory_space<vmem>>, vector<1x32xf32>
    %109 = vector.shape_cast %108 : vector<1x32xf32> to vector<32xf32>
    %cst_34 = arith.constant dense<0.000000e+00> : vector<8xf32>
    %110 = vector.multi_reduction <add>, %105, %cst_34 [1] : vector<8x32xf32> to vector<8xf32>
    %111 = vector.shape_cast %110 : vector<8xf32> to vector<8x1xf32>
    %cst_35 = arith.constant 3.200000e+01 : f32
    %112 = vector.broadcast %cst_35 : f32 to vector<8x1xf32>
    %113 = arith.divf %111, %112 : vector<8x1xf32>
    %114 = vector.broadcast %113 : vector<8x1xf32> to vector<8x32xf32>
    %115 = arith.subf %105, %114 : vector<8x32xf32>
    %116 = arith.mulf %115, %115 : vector<8x32xf32>
    %cst_36 = arith.constant dense<0.000000e+00> : vector<8xf32>
    %117 = vector.multi_reduction <add>, %116, %cst_36 [1] : vector<8x32xf32> to vector<8xf32>
    %118 = vector.shape_cast %117 : vector<8xf32> to vector<8x1xf32>
    %cst_37 = arith.constant 3.200000e+01 : f32
    %119 = vector.broadcast %cst_37 : f32 to vector<8x1xf32>
    %120 = arith.divf %118, %119 : vector<8x1xf32>
    %121 = vector.broadcast %113 : vector<8x1xf32> to vector<8x32xf32>
    %122 = arith.subf %105, %121 : vector<8x32xf32>
    %cst_38 = arith.constant 9.99999974E-6 : f32
    %123 = vector.broadcast %cst_38 : f32 to vector<8x1xf32>
    %124 = arith.addf %120, %123 : vector<8x1xf32>
    %125 = math.rsqrt %124 : vector<8x1xf32>
    %126 = vector.broadcast %125 : vector<8x1xf32> to vector<8x32xf32>
    %127 = arith.mulf %122, %126 : vector<8x32xf32>
    %128 = vector.shape_cast %107 : vector<32xf32> to vector<1x32xf32>
    %129 = vector.broadcast %128 : vector<1x32xf32> to vector<8x32xf32>
    %130 = arith.mulf %127, %129 : vector<8x32xf32>
    %131 = vector.shape_cast %109 : vector<32xf32> to vector<1x32xf32>
    %132 = vector.broadcast %131 : vector<1x32xf32> to vector<8x32xf32>
    %133 = arith.addf %130, %132 : vector<8x32xf32>
    %c0_39 = arith.constant 0 : index
    %c0_40 = arith.constant 0 : index
    %134 = vector.load %arg12[%c0_39, %c0_40] : memref<32x128xf32, #tpu.memory_space<vmem>>, vector<32x128xf32>
    %cst_41 = arith.constant dense<0.000000e+00> : vector<8x128xf32>
    %135 = tpu.matmul %133, %134, %cst_41 {dimension_numbers = #tpu.dot_dimension_numbers<[1], [0], [0], [1], [0, 0, 1, 1], [], []>} : vector<8x32xf32>, vector<32x128xf32>, vector<8x128xf32> -> vector<8x128xf32>
    %c0_42 = arith.constant 0 : index
    %c0_43 = arith.constant 0 : index
    %136 = vector.load %arg13[%c0_42, %c0_43] : memref<1x128xf32, #tpu.memory_space<vmem>>, vector<1x128xf32>
    %137 = vector.shape_cast %136 : vector<1x128xf32> to vector<128xf32>
    %138 = vector.shape_cast %137 : vector<128xf32> to vector<1x128xf32>
    %139 = vector.broadcast %138 : vector<1x128xf32> to vector<8x128xf32>
    %140 = arith.addf %135, %139 : vector<8x128xf32>
    %cst_44 = arith.constant 5.000000e-01 : f32
    %141 = vector.broadcast %cst_44 : f32 to vector<8x128xf32>
    %142 = arith.mulf %141, %140 : vector<8x128xf32>
    %cst_45 = arith.constant 0.707106769 : f32
    %143 = vector.broadcast %cst_45 : f32 to vector<8x128xf32>
    %144 = arith.mulf %140, %143 : vector<8x128xf32>
    %145 = math.erf %144 : vector<8x128xf32>
    %cst_46 = arith.constant 1.000000e+00 : f32
    %146 = vector.broadcast %cst_46 : f32 to vector<8x128xf32>
    %147 = arith.addf %146, %145 : vector<8x128xf32>
    %148 = arith.mulf %142, %147 : vector<8x128xf32>
    %c0_47 = arith.constant 0 : index
    %c0_48 = arith.constant 0 : index
    %149 = vector.load %arg14[%c0_47, %c0_48] : memref<128x32xf32, #tpu.memory_space<vmem>>, vector<128x32xf32>
    %cst_49 = arith.constant dense<0.000000e+00> : vector<8x32xf32>
    %150 = tpu.matmul %148, %149, %cst_49 {dimension_numbers = #tpu.dot_dimension_numbers<[1], [0], [0], [1], [0, 0, 1, 1], [], []>} : vector<8x128xf32>, vector<128x32xf32>, vector<8x32xf32> -> vector<8x32xf32>
    %c0_50 = arith.constant 0 : index
    %c0_51 = arith.constant 0 : index
    %151 = vector.load %arg15[%c0_50, %c0_51] : memref<1x32xf32, #tpu.memory_space<vmem>>, vector<1x32xf32>
    %152 = vector.shape_cast %151 : vector<1x32xf32> to vector<32xf32>
    %153 = vector.shape_cast %152 : vector<32xf32> to vector<1x32xf32>
    %154 = vector.broadcast %153 : vector<1x32xf32> to vector<8x32xf32>
    %155 = arith.addf %150, %154 : vector<8x32xf32>
    %156 = arith.addf %105, %155 : vector<8x32xf32>
    %c0_52 = arith.constant 0 : index
    %c0_53 = arith.constant 0 : index
    %c0_54 = arith.constant 0 : index
    %157 = vector.load %arg16[%c0_52, %c0_53, %c0_54] : memref<1x8x32xf32, #tpu.memory_space<vmem>>, vector<1x8x32xf32>
    %158 = vector.shape_cast %157 : vector<1x8x32xf32> to vector<8x32xf32>
    %159 = vector.shape_cast %156 : vector<8x32xf32> to vector<1x8x32xf32>
    tpu.vector_store %arg16[%c0_52, %c0_53, %c0_54], %159 {strides = array<i32>} : memref<1x8x32xf32, #tpu.memory_space<vmem>>, vector<1x8x32xf32>,
    return
  }
  func.func @transform_0(%arg0: i32, %arg1: i32) -> (i32, i32, i32) {
    %c0_i32 = arith.constant 0 : i32
    %c0_i32_0 = arith.constant 0 : i32
    %c0_i32_1 = arith.constant 0 : i32
    return %arg0, %c0_i32, %c0_i32_0 : i32, i32, i32
  }
  func.func @transform_1(%arg0: i32, %arg1: i32) -> (i32, i32) {
    %c0_i32 = arith.constant 0 : i32
    %c0_i32_0 = arith.constant 0 : i32
    return %arg1, %c0_i32 : i32, i32
  }
  func.func @transform_2(%arg0: i32, %arg1: i32) -> (i32, i32) {
    %c0_i32 = arith.constant 0 : i32
    %c0_i32_0 = arith.constant 0 : i32
    %c0_i32_1 = arith.constant 0 : i32
    return %c0_i32, %c0_i32_0 : i32, i32
  }
  func.func @transform_3(%arg0: i32, %arg1: i32) -> (i32, i32) {
    %c0_i32 = arith.constant 0 : i32
    %c0_i32_0 = arith.constant 0 : i32
    %c0_i32_1 = arith.constant 0 : i32
    return %c0_i32, %c0_i32_0 : i32, i32
  }
  func.func @transform_4(%arg0: i32, %arg1: i32) -> (i32, i32) {
    %c0_i32 = arith.constant 0 : i32
    %c0_i32_0 = arith.constant 0 : i32
    %c0_i32_1 = arith.constant 0 : i32
    return %c0_i32, %c0_i32_0 : i32, i32
  }
  func.func @transform_5(%arg0: i32, %arg1: i32) -> (i32, i32) {
    %c0_i32 = arith.constant 0 : i32
    %c0_i32_0 = arith.constant 0 : i32
    %c0_i32_1 = arith.constant 0 : i32
    return %c0_i32, %c0_i32_0 : i32, i32
  }
  func.func @transform_6(%arg0: i32, %arg1: i32) -> (i32, i32) {
    %c0_i32 = arith.constant 0 : i32
    %c0_i32_0 = arith.constant 0 : i32
    %c0_i32_1 = arith.constant 0 : i32
    return %c0_i32, %c0_i32_0 : i32, i32
  }
  func.func @transform_7(%arg0: i32, %arg1: i32) -> (i32, i32) {
    %c0_i32 = arith.constant 0 : i32
    %c0_i32_0 = arith.constant 0 : i32
    %c0_i32_1 = arith.constant 0 : i32
    return %c0_i32, %c0_i32_0 : i32, i32
  }
  func.func @transform_8(%arg0: i32, %arg1: i32) -> (i32, i32) {
    %c0_i32 = arith.constant 0 : i32
    %c0_i32_0 = arith.constant 0 : i32
    %c0_i32_1 = arith.constant 0 : i32
    return %c0_i32, %c0_i32_0 : i32, i32
  }
  func.func @transform_9(%arg0: i32, %arg1: i32) -> (i32, i32) {
    %c0_i32 = arith.constant 0 : i32
    %c0_i32_0 = arith.constant 0 : i32
    %c0_i32_1 = arith.constant 0 : i32
    return %c0_i32, %c0_i32_0 : i32, i32
  }
  func.func @transform_10(%arg0: i32, %arg1: i32) -> (i32, i32) {
    %c0_i32 = arith.constant 0 : i32
    %c0_i32_0 = arith.constant 0 : i32
    %c0_i32_1 = arith.constant 0 : i32
    return %c0_i32, %c0_i32_0 : i32, i32
  }
  func.func @transform_11(%arg0: i32, %arg1: i32) -> (i32, i32) {
    %c0_i32 = arith.constant 0 : i32
    %c0_i32_0 = arith.constant 0 : i32
    %c0_i32_1 = arith.constant 0 : i32
    return %c0_i32, %c0_i32_0 : i32, i32
  }
  func.func @transform_12(%arg0: i32, %arg1: i32) -> (i32, i32) {
    %c0_i32 = arith.constant 0 : i32
    %c0_i32_0 = arith.constant 0 : i32
    %c0_i32_1 = arith.constant 0 : i32
    return %c0_i32, %c0_i32_0 : i32, i32
  }
  func.func @transform_13(%arg0: i32, %arg1: i32) -> (i32, i32) {
    %c0_i32 = arith.constant 0 : i32
    %c0_i32_0 = arith.constant 0 : i32
    %c0_i32_1 = arith.constant 0 : i32
    return %c0_i32, %c0_i32_0 : i32, i32
  }
  func.func @transform_14(%arg0: i32, %arg1: i32) -> (i32, i32, i32) {
    %c0_i32 = arith.constant 0 : i32
    %c0_i32_0 = arith.constant 0 : i32
    return %arg0, %arg1, %c0_i32 : i32, i32, i32
  }
}

</mosaic_0001>

<bundles_post_ra>
// kernel: tpu_custom_call.1
= control target key start
LH: loop header
LB: loop body
LE: loop exit
PB: predicated region body
PF: predicated region fallthrough
CT: control target
= control target key end

     0   :  { %s2656_s0 = inlined_call_operand.vmem [shape: f32[2,8,32], index: 0, kind: input, shape index: {}]   ;;  %s2657_s1 = inlined_call_operand.vmem [shape: f32[8,8], index: 1, kind: input, shape index: {}]   ;;  %s2658_s2 = inlined_call_operand.vmem [shape: f32[1,32], index: 2, kind: input, shape index: {}]   ;;  %s2659_s3 = inlined_call_operand.vmem [shape: f32[1,32], index: 3, kind: input, shape index: {}]   ;;  %s2660_s4 = inlined_call_operand.vmem [shape: f32[32,32], index: 4, kind: input, shape index: {}]   ;;  %s2661_s5 = inlined_call_operand.vmem [shape: f32[32,64], index: 5, kind: input, shape index: {}]   ;;  %s2662_s6 = inlined_call_operand.vmem [shape: f32[32,32], index: 6, kind: input, shape index: {}]   ;;  %s2663_s7 = inlined_call_operand.vmem [shape: f32[1,32], index: 7, kind: input, shape index: {}]   ;;  %s2664_s8 = inlined_call_operand.vmem [shape: f32[1,32], index: 8, kind: input, shape index: {}]   ;;  %s2665_s9 = inlined_call_operand.vmem [shape: f32[1,32], index: 9, kind: input, shape index: {}]   ;;  %s2666_s10 = inlined_call_operand.vmem [shape: f32[32,128], index: 10, kind: input, shape index: {}]   ;;  %s2667_s11 = inlined_call_operand.vmem [shape: f32[1,128], index: 11, kind: input, shape index: {}]   ;;  %s2668_s12 = inlined_call_operand.vmem [shape: f32[128,32], index: 12, kind: input, shape index: {}]   ;;  %s2669_s13 = inlined_call_operand.vmem [shape: f32[1,32], index: 13, kind: input, shape index: {}]   ;;  %s2670_s14 = inlined_call_operand.hbm [shape: f32[2,8,32], index: 14, kind: output, shape index: {}]  }
   0x1   :  { %2672 = sst [smem:[#allocation7_spill]] %s2656_s0 }
   0x2   :  { %2673 = sst [smem:[#allocation8_spill]] %s2657_s1 }
   0x3   :  { %2674 = sst [smem:[#allocation9_spill]] %s2658_s2 }
   0x4   :  { %2675 = sst [smem:[#allocation10_spill]] %s2659_s3 }
   0x5   :  { %19 = vsyncpa [#allocation4], 0 }
   0x6   :  { %21 = vsyncpa [#allocation4 + $0x1], 0  ;;  %s2313_s29 = smov 0   ;;  %s2315_s30 = smov 0  }
   0x7   :  { %s2317_s15 = smov 0   ;;  %s2319_s16 = smov 0  }
   0x8   :  { %s2321_s17 = smov 0   ;;  %s2323_s18 = smov 0  }
   0x9 LB: > { %s1799_s19 = sadd.s32 4294967295, %s2224_s18   ;;  %s1800_s20 = sadd.s32 4294967294, %s2224_s18   ;;  %s2224_s18 = sphi %s2323_s18, %s27_s18   ;;  %s2220_s17 = sphi %s2321_s17, %s2688_s17   ;;  %s2216_s16 = sphi %s2319_s16, %s2687_s16   ;;  %s2212_s15 = sphi %s2317_s15, %s2686_s15   ;;  %s2208_s30 = sphi %s2315_s30, %s2685_s30   ;;  %s2204_s29 = sphi %s2313_s29, %s2684_s29  }
   0xa   : > { %s39_s21 = sadd.s32 1, %s2220_s17  ;;  %s352_s22 = sadd.s32 1, %s2212_s15 }
   0xb   : > { %p41_p0 = scmp.ge.s32.totalorder %s39_s21, 2  ;;  %p362_p1 = scmp.ne.s32.totalorder %s2212_s15, %s2208_s30 }
   0xc   : > { %p363_p2 = scmp.eq.s32.totalorder %s1799_s19, 1  ;;  %p368_p3 = scmp.ne.s32.totalorder %s2208_s30, %s2204_s29 }
   0xd   : > { %s2690_s21 = smov (%p41_p0, %s39_s21), 0  ;;  %p369_p5 = scmp.eq.s32.totalorder %s1800_s20, 1 }
   0xe   : > { %2676 = sst [smem:[#allocation6_spill]] %s2690_s21  ;;  %p2353_p4 = por %p363_p2, %p362_p1 }
   0xf   : > { %s347_s24 = ssub.s32 %s2220_s17, %s2690_s21  ;;  %p1804_p6 = scmp.ge.s32.totalorder %s2224_s18, 1 }
  0x10   : > { %p350_p7 = scmp.eq.s32.totalorder %s347_s24, 0  ;;  %p2360_p8 = por %p369_p5, %p368_p3 }
  0x11   : > { %p437_p9 = scmp.lt.s32.totalorder %s2224_s18, 3 }
  0x12   : > { %s2366_s26 = scalar_select %p350_p7, %s2212_s15, %s352_s22  }
  0x13   : > { %p438_p10 = pnand %p1804_p6, %p437_p9 }
  0x14   : > { %p486_p11 = scmp.lt.s32.totalorder (!%p438_p10), %s2216_s16, 1  ;;  %vm501_vm0 = vcmask (!%p438_p10), 261120   ;;  %s2679_s0 = sld [smem:[#allocation7_spill]] (!%p438_p10)  ;;  %v530_v12 = vld [vmem:[%s2661_s5] sm:$0xff] (!%p438_p10)  ;;  %v531_v13 = vld [vmem:[%s2661_s5 + $0x8] sm:$0xff] (!%p438_p10)  ;;  %v2226_v15 = vmov (!%p438_p10), 0.0|0.0  }
  0x15   : > { %441 = sbr.rel (%p438_p10) target bundleno = 2593 (0xa21), region = 76  ;;  %v2009_v14 = vpack.c.bf16 (!%p438_p10), %v531_v13, %v530_v12  ;;  %2008 = vmatprep.subr.bf16.mxu1 (!%p438_p10), %v2226_v15  ;;  %v532_v16 = vld [vmem:[%s2661_s5 + $0x10] sm:$0xff] (!%p438_p10)  ;;  %v533_v17 = vld [vmem:[%s2661_s5 + $0x18] sm:$0xff] (!%p438_p10)  ;;  %vm2227_vm1 = vmmov (!%p438_p10), 0   ;;  %v2228_v19 = vmov (!%p438_p10), 0.0   ;;  %s2680_s2 = sld [smem:[#allocation9_spill]] (!%p438_p10) }
  0x16   : > { %v2012_v18 = vpack.c.bf16 (!%p438_p10), %v533_v17, %v532_v16  ;;  %1897 = vmatprep.mubr.msk.f32.mxu1 (!%p438_p10), %vm2227_vm1, %v2228_v19  ;;  %1911 = vmatprep.subr.mxu0 (!%p438_p10), %v2228_v19  ;;  %v643_v29 = vld [vmem:[%s2660_s4] sm:$0xff] (!%p438_p10)  ;;  %v644_v30 = vld [vmem:[%s2660_s4 + $0x8] sm:$0xff] (!%p438_p10)  ;;  %s2681_s3 = sld [smem:[#allocation10_spill]] (!%p438_p10)  ;;  %v645_v37 = vld [vmem:[%s2660_s4 + $0x10] sm:$0xff] (!%p438_p10)  ;;  %vm607_vm2 = vcmask (!%p438_p10), 523264   ;;  %vm739_vm3 = vcmask (!%p438_p10), 64512  }
  0x17   : > { %2010 = vmatpush3.bf16.msra.mxu1 (!%p438_p10), %v2009_v14  ;;  %1913 = vmatprep.mubr.msk.f32.mxu0 (!%p438_p10), %vm2227_vm1, %v2228_v19  ;;  %v2015_v34 = vpack.c.bf16 (!%p438_p10), %v644_v30, %v643_v29  ;;  %v646_v38 = vld [vmem:[%s2660_s4 + $0x18] sm:$0xff] (!%p438_p10)  ;;  %s2230_s24 = smov (!%p438_p10), 112   ;;  %s2682_s1 = sld [smem:[#allocation8_spill]] (!%p438_p10)  ;;  %v2232_v55 = vmov (!%p438_p10), -1e+30   ;;  %vm1397_vm5 = vcmask (!%p438_p10), 130048  }
  0x18   : > { %2011 = vmatprep.subr.bf16.mxu1 (!%p438_p10), %v2226_v15  ;;  %v2018_v39 = vpack.c.bf16 (!%p438_p10), %v646_v38, %v645_v37  ;;  %s2233_s20 = smov (!%p438_p10), 96   ;;  %vm1399_vm6 = vcmask (!%p438_p10), 195584  }
  0x1b   : > { %2013 = vmatpush3.bf16.msra.mxu1 (!%p438_p10), %v2012_v18  ;;  %v1807_v27 = vld [vmem:[%s2680_s2] ss:$0 sm:$0xff] (!%p438_p10)  ;;  %s2229_s2 = smov (!%p438_p10), 120  }
  0x1c   : > { %s487_s27 = scalar_select %p486_p11, %s2216_s16, 1  ;;  %2014 = vmatprep.subr.bf16.mxu1 %v2226_v15  ;;  %v1808_v31 = vld [vmem:[%s2681_s3] ss:$0 sm:$0xff] }
  0x1d   : > { %v736_v54 = vld [vmem:[%s2682_s1] sm:$0xff]  ;;  %s1833_s1 = sshll.u32 %s2216_s16, 7 }
  0x1e   : > { %s1806_s28 = sshll.u32 %s487_s27, 3  ;;  %s2231_s27 = smov 104   ;;  %vm737_vm4 = vcmp.gt.f32.partialorder %v736_v54, 0.5  ;;  %v1404_v54 = vld [vmem:[%s2662_s6 + $0x18] sm:$0xff] }
  0x1f   : > { %s489_s21 = scalar_lea.vmem %s2679_s0, %s1806_s28  ;;  %v738_v56 = vsel %vm737_vm4, 0.0, %v2232_v55  ;;  %s2235_s0 = smov 8  }
  0x20   : > { %v2373_v0 = vld [vmem:[%s489_s21] sm:$0xff]  ;;  %s2236_s21 = smov 24  }
  0x21   : > { %v502_v1 = vsel %vm501_vm0, %v2373_v0, 0.0 }
  0x22   : > { %503 = vadd.xlane.f32.xlu0 %v502_v1 }
  0x26   : > { %616 = vadd.xlane.f32.xlu0 %v502_v1 }
  0xaf   : > { %v504_v2 = vpop.xlane.xlu0 %503 }
  0xb0   : > { %v506_v3 = vmul.f32 0.03125, %v504_v2 }
  0xb2   : > { %v507_v4 = vsub.f32 %v2373_v0, %v506_v3 }
  0xb3   : > { %v617_v5 = vpop.xlane.xlu0 %616 }
  0xb4   : > { %v619_v6 = vmul.f32 0.03125, %v617_v5  ;;  %v508_v7 = vmul.f32 %v507_v4, %v507_v4 }
  0xb6   : > { %v620_v8 = vsub.f32 %v2373_v0, %v619_v6  ;;  %v509_v9 = vsel %vm501_vm0, %v508_v7, 0.0 }
  0xb7   : > { %510 = vadd.xlane.f32.xlu1 %v509_v9 }
  0xb8   : > { %v621_v10 = vmul.f32 %v620_v8, %v620_v8 }
  0xba   : > { %v622_v11 = vsel %vm501_vm0, %v621_v10, 0.0 }
  0xbb   : > { %623 = vadd.xlane.f32.xlu1 %v622_v11 }
 0x144   : > { %v511_v20 = vpop.xlane.xlu1 %510 }
 0x145   : > { %v512_v21 = vmul.f32 0.03125, %v511_v20 }
 0x147   : > { %v513_v22 = vadd.f32 1e-05, %v512_v21 }
 0x148   : > { %v624_v23 = vpop.xlane.xlu1 %623 }
 0x149   : > { %2122 = vrsqrt.f32 %v513_v22  ;;  %v625_v24 = vmul.f32 0.03125, %v624_v23 }
 0x14b   : > { %v626_v25 = vadd.f32 1e-05, %v625_v24 }
 0x14d   : > { %2124 = vrsqrt.f32 %v626_v25 }
 0x153   : > { %v2123_v26 = vpop.eup %2122 }
 0x154   : > { %v515_v28 = vmul.f32 %v2123_v26, %v507_v4 }
 0x156   : > { %v522_v32 = vmul.f32 %v1807_v27, %v515_v28 }
 0x157   : > { %v2125_v33 = vpop.eup %2124 }
 0x158   : > { %v628_v35 = vmul.f32 %v2125_v33, %v620_v8  ;;  %v529_v36 = vadd.f32 %v1808_v31, %v522_v32 }
 0x15a   : > { %1898 = vmatmul.mubr.msk.f32.vlgmr.msra.gmra.mrb[0].mxu1 %vm501_vm0, %v529_v36  ;;  %v635_v40 = vmul.f32 %v1807_v27, %v628_v35 }
 0x15b   : > { %2016 = vmatpush3.bf16.msra.mxu1 %v2015_v34  ;;  %1908 = vmatprep.mubr.msk.f32.mxu1 %vm2227_vm1, %v2228_v19 }
 0x15c   : > { %2017 = vmatprep.subr.bf16.mxu1 %v2226_v15  ;;  %v642_v41 = vadd.f32 %v1808_v31, %v635_v40 }
 0x15f   : > { %2019 = vmatpush3.bf16.msra.mxu1 %v2018_v39 }
 0x160   : > { %1916 = vmatprep.subr.mxu1 %v2228_v19 }
 0x162   : > { %1909 = vmatmul.mubr.msk.f32.vlgmr.msra.gmra.mrb[2].mxu1 %vm501_vm0, %v642_v41 }
 0x163   : > { %1918 = vmatprep.mubr.msk.f32.mxu1 %vm2227_vm1, %v2228_v19 }
 0x22d   : > { %v603_v42 = vpop.f32.mrb[0].mxu1 }
 0x22e   : > { %608 = vst.msk [vmem:[#allocation2] sm:$0xff] %vm607_vm2, %v603_v42  ;;  %v1899_v43 = vpop.f32.mrb[1].mxu1 }
 0x235   : > { %v716_v44 = vpop.f32.mrb[2].mxu1  ;;  %v2427_v45 = vld [vmem:[#allocation2] sm:$0xff] }
 0x236   : > { %v1910_v46 = vpop.f32.mrb[3].mxu1  ;;  %730 = vrot.lane.b32.xlu0 %v2427_v45, %s2229_s2  ;;  %1912 = vmatpush3.xpose.msk.msra.mxu0 %vm739_vm3, %v2427_v45  ;;  %v720_v47 = vmul.f32 0.35355338, %v716_v44 }
 0x237   : > { %732 = vrot.lane.b32.xlu1 %v2427_v45, %s2230_s24  ;;  %1921 = vmatprep.subr.mxu0 %v2228_v19 }
 0x239   : > { %1914 = vmatmul.mubr.msk.f32.vlgmr.msra.gmra.mrb[0].mxu0 %vm739_vm3, %v720_v47 }
 0x23a   : > { %725 = vrot.lane.b32.xlu0 %v720_v47, %s2230_s24  ;;  %1923 = vmatprep.mubr.msk.f32.mxu0 %vm2227_vm1, %v2228_v19 }
 0x23b   : > { %734 = vrot.lane.b32.xlu1 %v2427_v45, %s2231_s27 }
 0x23f   : > { %723 = vrot.lane.b32.xlu1 %v720_v47, %s2229_s2 }
 0x243   : > { %727 = vrot.lane.b32.xlu1 %v720_v47, %s2231_s27 }
 0x2a8   : > { %v2438_v48 = vpop.permute.xlu0 %730 }
 0x2a9   : > { %v2440_v49 = vpop.permute.xlu1 %732  ;;  %1917 = vmatpush3.xpose.msk.msra.mxu1 %vm739_vm3, %v2438_v48 }
 0x2aa   : > { %1922 = vmatpush3.xpose.msk.msra.mxu0 %vm739_vm3, %v2440_v49  ;;  %1926 = vmatprep.subr.mxu1 %v2228_v19 }
 0x2ab   : > { %1931 = vmatprep.subr.mxu0 %v2228_v19 }
 0x2ac   : > { %v726_v50 = vpop.permute.xlu0 %725 }
 0x2ad   : > { %v2448_v51 = vpop.permute.xlu1 %734  ;;  %1924 = vmatmul.mubr.msk.f32.vlgmr.msra.gmra.mrb[2].mxu0 %vm739_vm3, %v726_v50  ;;  %v1401_v50 = vld [vmem:[%s2662_s6] sm:$0xff] }
 0x2ae   : > { %1933 = vmatprep.mubr.msk.f32.mxu0 %vm2227_vm1, %v2228_v19 }
 0x2b1   : > { %v724_v52 = vpop.permute.xlu1 %723 }
 0x2b2   : > { %1919 = vmatmul.mubr.msk.f32.vlgmr.msra.gmra.mrb[4].mxu1 %vm739_vm3, %v724_v52  ;;  %v1403_v52 = vld [vmem:[%s2662_s6 + $0x10] sm:$0xff] }
 0x2b3   : > { %1927 = vmatpush3.xpose.msk.msra.mxu1 %vm739_vm3, %v2448_v51  ;;  %1928 = vmatprep.mubr.msk.f32.mxu1 %vm2227_vm1, %v2228_v19  ;;  %v2024_v55 = vpack.c.bf16 %v1404_v54, %v1403_v52  ;;  %v1618_v52 = vld [vmem:[%s2668_s12 + $0x70] sm:$0xff] }
 0x2b4   : > { %1936 = vmatprep.subr.mxu1 %v2228_v19 }
 0x2b5   : > { %v728_v53 = vpop.permute.xlu1 %727 }
 0x2b6   : > { %1929 = vmatmul.mubr.msk.f32.vlgmr.msra.gmra.mrb[6].mxu1 %vm739_vm3, %v728_v53 }
 0x2b7   : > { %1938 = vmatprep.mubr.msk.f32.mxu1 %vm2227_vm1, %v2228_v19 }
 0x30c   : > { %v810_v57 = vpop.f32.mrb[0].mxu0 }
 0x30d   : > { %v811_v58 = vadd.f32 %v810_v57, %v738_v56  ;;  %v1915_v59 = vpop.f32.mrb[1].mxu0 }
 0x30f   : > { %v1036_v60 = vsel %vm739_vm3, %v811_v58, -inf }
 0x310   : > { %1037 = vmax.xlane.f32.xlu0 %v1036_v60 }
 0x380   : > { %v958_v61 = vpop.f32.mrb[2].mxu0 }
 0x381   : > { %v959_v62 = vadd.f32 %v958_v61, %v738_v56  ;;  %v1925_v63 = vpop.f32.mrb[3].mxu0 }
 0x383   : > { %v1042_v1 = vsel %vm739_vm3, %v959_v62, -inf }
 0x384   : > { %1043 = vmax.xlane.f32.xlu0 %v1042_v1 }
 0x385   : > { %v884_v2 = vpop.f32.mrb[4].mxu1 }
 0x386   : > { %v885_v3 = vadd.f32 %v884_v2, %v738_v56  ;;  %v1920_v4 = vpop.f32.mrb[5].mxu1 }
 0x388   : > { %v1039_v5 = vsel %vm739_vm3, %v885_v3, -inf }
 0x389   : > { %1040 = vmax.xlane.f32.xlu1 %v1039_v5  ;;  %v1032_v6 = vpop.f32.mrb[6].mxu1  ;;  %v1825_v5 = vld [vmem:[%s2663_s7] ss:$0 sm:$0xff] }
 0x38a   : > { %v1033_v7 = vadd.f32 %v1032_v6, %v738_v56  ;;  %v1930_v8 = vpop.f32.mrb[7].mxu1 }
 0x38c   : > { %v1045_v9 = vsel %vm739_vm3, %v1033_v7, -inf }
 0x38d   : > { %1046 = vmax.xlane.f32.xlu0 %v1045_v9 }
 0x39d   : > { %v1038_v10 = vpop.xlane.xlu0 %1037 }
 0x39e   : > { %v1048_v11 = vsub.f32 %v811_v58, %v1038_v10 }
 0x3a0   : > { %v1052_v12 = vmul.f32 1.442695, %v1048_v11 }
 0x3a2   : > { %2126 = vpow2.f32 %v1052_v12 }
 0x3ac   : > { %v2127_v13 = vpop.eup %2126 }
 0x3ad   : > { %v1060_v14 = vsel %vm739_vm3, %v2127_v13, 0.0 }
 0x3ae   : > { %1061 = vadd.xlane.f32.xlu0 %v1060_v14 }
 0x411   : > { %v1044_v16 = vpop.xlane.xlu0 %1043 }
 0x412   : > { %v1050_v17 = vsub.f32 %v959_v62, %v1044_v16  ;;  %v1515_v16 = vld [vmem:[%s2666_s10] sm:$0xff] }
 0x414   : > { %v1056_v18 = vmul.f32 1.442695, %v1050_v17 }
 0x416   : > { %2128 = vpow2.f32 %v1056_v18  ;;  %v1041_v20 = vpop.xlane.xlu1 %1040  ;;  %v1517_v18 = vld [vmem:[%s2666_s10 + $0x10] sm:$0xff] }
 0x417   : > { %v1049_v21 = vsub.f32 %v885_v3, %v1041_v20  ;;  %v1518_v20 = vld [vmem:[%s2666_s10 + $0x18] sm:$0xff] }
 0x419   : > { %v1054_v22 = vmul.f32 1.442695, %v1049_v21  ;;  %v2030_v21 = vpack.c.bf16 %v1518_v20, %v1517_v18 }
 0x41a   : > { %v1047_v27 = vpop.xlane.xlu0 %1046 }
 0x41b   : > { %2130 = vpow2.f32 %v1054_v22  ;;  %v1051_v28 = vsub.f32 %v1033_v7, %v1047_v27  ;;  %v1604_v22 = vld [vmem:[%s2668_s12] sm:$0xff] }
 0x41d   : > { %v1058_v29 = vmul.f32 1.442695, %v1051_v28  ;;  %v1608_v28 = vld [vmem:[%s2668_s12 + $0x20] sm:$0xff] }
 0x41f   : > { %2132 = vpow2.f32 %v1058_v29  ;;  %v1609_v29 = vld [vmem:[%s2668_s12 + $0x28] sm:$0xff] }
 0x420   : > { %v2129_v23 = vpop.eup %2128 }
 0x421   : > { %v1066_v24 = vsel %vm739_vm3, %v2129_v23, 0.0 }
 0x422   : > { %1067 = vadd.xlane.f32.xlu0 %v1066_v24  ;;  %v1606_v24 = vld [vmem:[%s2668_s12 + $0x10] sm:$0xff] }
 0x425   : > { %v2131_v25 = vpop.eup %2130 }
 0x426   : > { %v1063_v26 = vsel %vm739_vm3, %v2131_v25, 0.0 }
 0x427   : > { %1064 = vadd.xlane.f32.xlu1 %v1063_v26  ;;  %v1607_v26 = vld [vmem:[%s2668_s12 + $0x18] sm:$0xff] }
 0x428   : > { %v2036_v27 = vpack.c.bf16 %v1607_v26, %v1606_v24 }
 0x429   : > { %v2133_v30 = vpop.eup %2132 }
 0x42a   : > { %v1069_v31 = vsel %vm739_vm3, %v2133_v30, 0.0 }
 0x438   : > { %1156 = vrot.lane.b32.xlu1 %v2438_v48, %s2233_s20  ;;  %1080 = vrot.lane.b32.xlu0 %v2427_v45, %s2233_s20 }
 0x43b   : > { %v1062_v32 = vpop.xlane.xlu0 %1061 }
 0x43c   : > { %1232 = vrot.lane.b32.xlu1 %v2440_v49, %s2233_s20  ;;  %2134 = vrcp.f32 %v1062_v32 }
 0x446   : > { %v2135_v34 = vpop.eup %2134 }
 0x447   : > { %v1076_v35 = vmul.f32 %v2135_v34, %v2127_v13 }
 0x460   : > { %1070 = vadd.xlane.f32.xlu1 %v1069_v31 }
 0x471   : > { %1308 = vrot.lane.b32.xlu1 %v2448_v51, %s2233_s20  ;;  %v1402_v51 = vld [vmem:[%s2662_s6 + $0x8] sm:$0xff]  ;;  %s2234_s20 = smov 16  }
 0x472   : > { %v2021_v53 = vpack.c.bf16 %v1402_v51, %v1401_v50  ;;  %v1617_v50 = vld [vmem:[%s2668_s12 + $0x68] sm:$0xff] }
 0x4af   : > { %v1068_v33 = vpop.xlane.xlu0 %1067 }
 0x4b0   : > { %2136 = vrcp.f32 %v1068_v33 }
 0x4b3   : > { %v1081_v36 = vpop.permute.xlu0 %1080 }
 0x4b4   : > { %v1065_v37 = vpop.xlane.xlu1 %1064  ;;  %1932 = vmatpush3.msra.mxu0 %v1081_v36 }
 0x4b5   : > { %2138 = vrcp.f32 %v1065_v37  ;;  %1934 = vmatmul.mubr.msk.f32.vlgmr.msra.gmra.mrb[4].mxu0 %vm739_vm3, %v1076_v35  ;;  %1941 = vmatprep.subr.mxu0 %v2228_v19  ;;  %v1827_v35 = vld [vmem:[%s2664_s8] ss:$0 sm:$0xff] }
 0x4b6   : > { %1943 = vmatprep.mubr.msk.f32.mxu0 %vm2227_vm1, %v2228_v19  ;;  %v1828_v37 = vld [vmem:[%s2665_s9] ss:$0 sm:$0xff] }
 0x4b8   : > { %v1157_v38 = vpop.permute.xlu1 %1156 }
 0x4b9   : > { %1937 = vmatpush3.msra.mxu1 %v1157_v38 }
 0x4ba   : > { %v2137_v39 = vpop.eup %2136  ;;  %1946 = vmatprep.subr.mxu1 %v2228_v19 }
 0x4bb   : > { %v1078_v40 = vmul.f32 %v2137_v39, %v2129_v23  ;;  %v1605_v23 = vld [vmem:[%s2668_s12 + $0x8] sm:$0xff] }
 0x4bc   : > { %v1233_v41 = vpop.permute.xlu1 %1232 }
 0x4bd   : > { %1942 = vmatpush3.msra.mxu0 %v1233_v41  ;;  %v1611_v41 = vld [vmem:[%s2668_s12 + $0x38] sm:$0xff] }
 0x4be   : > { %1944 = vmatmul.mubr.msk.f32.vlgmr.msra.gmra.mrb[6].mxu0 %vm739_vm3, %v1078_v40  ;;  %2032 = vmatprep.subr.bf16.mxu0 %v2226_v15  ;;  %v1610_v40 = vld [vmem:[%s2668_s12 + $0x30] sm:$0xff] }
 0x4bf   : > { %v2139_v42 = vpop.eup %2138  ;;  %2005 = vmatprep.mubr.msk.f32.mxu0 %vm2227_vm1, %v2228_v19 }
 0x4c0   : > { %v1077_v43 = vmul.f32 %v2139_v42, %v2131_v25  ;;  %v2033_v25 = vpack.c.bf16 %v1605_v23, %v1604_v22  ;;  %v2042_v42 = vpack.c.bf16 %v1611_v41, %v1610_v40 }
 0x4c2   : > { %1939 = vmatmul.mubr.msk.f32.vlgmr.msra.gmra.mrb[8].mxu1 %vm739_vm3, %v1077_v43  ;;  %2034 = vmatpush3.bf16.msra.mxu0 %v2033_v25  ;;  %v1612_v43 = vld [vmem:[%s2668_s12 + $0x40] sm:$0xff] }
 0x4c3   : > { %1948 = vmatprep.mubr.msk.f32.mxu1 %vm2227_vm1, %v2228_v19  ;;  %2035 = vmatprep.subr.bf16.mxu0 %v2226_v15 }
 0x4c6   : > { %2037 = vmatpush3.bf16.msra.mxu0 %v2036_v27 }
 0x4c7   : > { %2038 = vmatprep.subr.bf16.mxu0 %v2226_v15 }
 0x4ed   : > { %v1071_v44 = vpop.xlane.xlu1 %1070 }
 0x4ee   : > { %2140 = vrcp.f32 %v1071_v44  ;;  %v1613_v44 = vld [vmem:[%s2668_s12 + $0x48] sm:$0xff] }
 0x4f1   : > { %v1309_v45 = vpop.permute.xlu1 %1308 }
 0x4f2   : > { %1947 = vmatpush3.msra.mxu1 %v1309_v45  ;;  %v2045_v45 = vpack.c.bf16 %v1613_v44, %v1612_v43 }
 0x4f3   : > { %2020 = vmatprep.subr.bf16.mxu1 %v2226_v15 }
 0x4f8   : > { %v2141_v46 = vpop.eup %2140 }
 0x4f9   : > { %v1079_v47 = vmul.f32 %v2141_v46, %v2133_v30  ;;  %v2039_v30 = vpack.c.bf16 %v1609_v29, %v1608_v28  ;;  %v1614_v46 = vld [vmem:[%s2668_s12 + $0x50] sm:$0xff] }
 0x4fb   : > { %1949 = vmatmul.mubr.msk.f32.vlgmr.msra.gmra.mrb[10].mxu1 %vm739_vm3, %v1079_v47  ;;  %2040 = vmatpush3.bf16.msra.mxu0 %v2039_v30  ;;  %v1615_v47 = vld [vmem:[%s2668_s12 + $0x58] sm:$0xff] }
 0x4fc   : > { %1959 = vmatprep.mubr.msk.f32.mxu1 %vm2227_vm1, %v2228_v19  ;;  %2022 = vmatpush3.bf16.msra.mxu1 %v2021_v53  ;;  %v1619_v53 = vld [vmem:[%s2668_s12 + $0x78] sm:$0xff] }
 0x4fd   : > { %2023 = vmatprep.subr.bf16.mxu1 %v2226_v15  ;;  %2041 = vmatprep.subr.bf16.mxu0 %v2226_v15  ;;  %v2054_v54 = vpack.c.bf16 %v1619_v53, %v1618_v52 }
 0x4ff   : > { %2043 = vmatpush3.bf16.msra.mxu0 %v2042_v42 }
 0x500   : > { %2025 = vmatpush3.bf16.msra.mxu1 %v2024_v55  ;;  %2044 = vmatprep.subr.bf16.mxu0 %v2226_v15  ;;  %v1829_v55 = vld [vmem:[%s2667_s11] ss:$0 sm:$0xff] }
 0x501   : > { %2026 = vmatprep.subr.bf16.mxu1 %v2226_v15 }
 0x503   : > { %2046 = vmatpush3.bf16.msra.mxu0 %v2045_v45 }
 0x504   : > { %2047 = vmatprep.subr.bf16.mxu0 %v2226_v15 }
 0x588   : > { %v1152_v48 = vpop.f32.mrb[4].mxu0 }
 0x589   : > { %v1935_v49 = vpop.f32.mrb[5].mxu0 }
 0x58a   : > { %v1616_v49 = vld [vmem:[%s2668_s12 + $0x60] sm:$0xff] }
 0x58b   : > { %v2051_v51 = vpack.c.bf16 %v1617_v50, %v1616_v49 }
 0x591   : > { %v1304_v56 = vpop.f32.mrb[6].mxu0 }
 0x592   : > { %1389 = vrot.lane.b32.xlu1 %v1304_v56, %s2234_s20  ;;  %v1945_v57 = vpop.f32.mrb[7].mxu0 }
 0x595   : > { %v1228_v58 = vpop.f32.mrb[8].mxu1 }
 0x596   : > { %v1940_v59 = vpop.f32.mrb[9].mxu1  ;;  %1385 = vrot.lane.b32.xlu0 %v1228_v58, %s2235_s0  ;;  %s2608_s0 = scalar_lea.hbm %s2670_s14, %s1833_s1 }
 0x5ce   : > { %v1380_v60 = vpop.f32.mrb[10].mxu1 }
 0x5cf   : > { %1393 = vrot.lane.b32.xlu0 %v1380_v60, %s2236_s21  ;;  %v1950_v61 = vpop.f32.mrb[11].mxu1  ;;  %s483_s21 = sand.u32 1, %s2208_s30  }
 0x5d0   : > { %s1805_s22 = sshll.u32 %s483_s21, 3  ;;  %s1700_s2 = scalar_lea.sflag [#allocation4], %s483_s21 }
 0x5d1   : > { %s485_s27 = scalar_lea.vmem [#allocation3], %s1805_s22  ;;  %s2237_s22 = smov [#allocation3]  }
 0x5d2   : > { %s1714_s28 = sshll.u32 %s485_s27, 4  ;;  %s2150_s24 = sshll.u32 %s2237_s22, 4  ;;  %s2610_s28 = int_to_ptr.vmem [resolvable:$true] %s1714_s28  ;;  %s2151_s24 = int_to_ptr.vmem [resolvable:$false] %s2150_s24 }
 0x5d3   : > { %s2146_s16 = scalar_lea.vmem %s2610_s28, 128  ;;  %s2152_s3 = scalar_lea.vmem %s2151_s24, 256 }
 0x5d4   : > { %p2147_p12 = scmp.ne.s32.totalorder %s2610_s28, %s2146_s16  ;;  %p2153_p1 = scmp.lt.s32.totalorder %s2610_s28, %s2151_s24 }
 0x5d5   : > { %p2154_p2 = scmp.lt.s32.totalorder %s2152_s3, %s2146_s16 }
 0x5d6   : > { %p2148_p13 = pnand %p2147_p12, %p2353_p4 }
 0x5d7   : > { %p2155_p3 = por %p2154_p2, %p2153_p1 }
 0x5d8   : > { %p2149_p0 = pneg %p2148_p13 }
 0x5da   : > { %p2156_p5 = pnand %p2155_p3, %p2149_p0 }
 0x604   : > { %v1390_v1 = vpop.permute.xlu1 %1389 }
 0x608   : > { %v1386_v62 = vpop.permute.xlu0 %1385 }
 0x609   : > { %v1396_v63 = vsel %vm739_vm3, %v1152_v48, %v1386_v62  ;;  %v2048_v48 = vpack.c.bf16 %v1615_v47, %v1614_v46 }
 0x60a   : > { %v1398_v2 = vsel %vm1397_vm5, %v1396_v63, %v1390_v1  ;;  %v1831_v63 = vld [vmem:[%s2669_s13] ss:$0 sm:$0xff] }
 0x60b   : > { %2049 = vmatpush3.bf16.msra.mxu0 %v2048_v48 }
 0x60c   : > { %2050 = vmatprep.subr.bf16.mxu0 %v2226_v15 }
 0x60f   : > { %2052 = vmatpush3.bf16.msra.mxu0 %v2051_v51 }
 0x610   : > { %2053 = vmatprep.subr.bf16.mxu0 %v2226_v15 }
 0x613   : > { %2055 = vmatpush3.bf16.msra.mxu0 %v2054_v54 }
 0x641   : > { %v1394_v3 = vpop.permute.xlu0 %1393 }
 0x642   : > { %v1400_v4 = vsel %vm1399_vm6, %v1398_v2, %v1394_v3 }
 0x643   : > { %1960 = vmatmul.mubr.msk.f32.vlgmr.msra.gmra.mrb[12].mxu1 %vm501_vm0, %v1400_v4 }
 0x644   : > { %1970 = vmatprep.mubr.msk.f32.mxu1 %vm2227_vm1, %v2228_v19 }
 0x716   : > { %v1481_v6 = vpop.f32.mrb[12].mxu1 }
 0x717   : > { %v1482_v7 = vadd.f32 %v1825_v5, %v1481_v6  ;;  %v1961_v8 = vpop.f32.mrb[13].mxu1 }
 0x719   : > { %v2515_v9 = vadd.f32 %v1482_v7, %v2373_v0  ;;  %v1516_v0 = vld [vmem:[%s2666_s10 + $0x8] sm:$0xff] }
 0x71a   : > { %v2027_v17 = vpack.c.bf16 %v1516_v0, %v1515_v16 }
 0x71b   : > { %v1488_v10 = vsel %vm501_vm0, %v2515_v9, 0.0 }
 0x71c   : > { %1489 = vadd.xlane.f32.xlu1 %v1488_v10  ;;  %2028 = vmatpush3.bf16.msra.mxu1 %v2027_v17 }
 0x71d   : > { %2029 = vmatprep.subr.bf16.mxu1 %v2226_v15 }
 0x720   : > { %2031 = vmatpush3.bf16.msra.mxu1 %v2030_v21 }
 0x7a9   : > { %v1490_v11 = vpop.xlane.xlu1 %1489 }
 0x7aa   : > { %v1491_v12 = vmul.f32 0.03125, %v1490_v11 }
 0x7ac   : > { %v1492_v13 = vsub.f32 %v2515_v9, %v1491_v12 }
 0x7ae   : > { %v1493_v14 = vmul.f32 %v1492_v13, %v1492_v13 }
 0x7b0   : > { %v1494_v19 = vsel %vm501_vm0, %v1493_v14, 0.0 }
 0x7b1   : > { %1495 = vadd.xlane.f32.xlu0 %v1494_v19 }
 0x83e   : > { %v1496_v31 = vpop.xlane.xlu0 %1495 }
 0x83f   : > { %v1497_v32 = vmul.f32 0.03125, %v1496_v31 }
 0x841   : > { %v1498_v33 = vadd.f32 1e-05, %v1497_v32 }
 0x843   : > { %2142 = vrsqrt.f32 %v1498_v33 }
 0x84d   : > { %v2143_v34 = vpop.eup %2142 }
 0x84e   : > { %v1500_v36 = vmul.f32 %v2143_v34, %v1492_v13 }
 0x850   : > { %v1507_v38 = vmul.f32 %v1827_v35, %v1500_v36 }
 0x852   : > { %v1514_v39 = vadd.f32 %v1828_v37, %v1507_v38 }
 0x854   : > { %1971 = vmatmul.mubr.msk.f32.vlgmr.msra.gmra.mrb[14].mxu1 %vm501_vm0, %v1514_v39 }
 0x927   : > { %v1595_v56 = vpop.f32.mrb[14].mxu1 }
 0x928   : > { %v1596_v57 = vadd.f32 %v1829_v55, %v1595_v56  ;;  %v1972_v58 = vpop.f32.mrb[15].mxu1 }
 0x92a   : > { %v1600_v15 = vmul.f32 0.70710677, %v1596_v57  ;;  %v1599_v60 = vmul.f32 0.5, %v1596_v57 }
 0x92c   : > { %2144 = verf.f32 %v1600_v15 }
 0x936   : > { %v2145_v59 = vpop.eup %2144 }
 0x937   : > { %v1602_v61 = vadd.f32 1.0, %v2145_v59 }
 0x939   : > { %v1603_v62 = vmul.f32 %v1602_v61, %v1599_v60 }
 0x93b   : > { %2006 = vmatmul.mubr.f32.vlgmr.msra.gmra.mrb[8].mxu0 %v1603_v62 }
 0xa0e   : > { %v1693_v1 = vpop.f32.mrb[8].mxu0 }
 0xa0f   : > { %v1694_v2 = vadd.f32 %v1831_v63, %v1693_v1  ;;  %v2007_v3 = vpop.f32.mrb[9].mxu0 }
 0xa11   : > { %v1697_v4 = vadd.f32 %v1694_v2, %v2515_v9 }
 0xa13   : > { %1698 = vst.msk [vmem:[%s485_s27] sm:$0xff] %vm501_vm0, %v1697_v4 }
 0xa14   : > { %2159 = shalt.err (!%p2156_p5)
}
 0xa15   : > { %s2160_s21 = scalar_lea.hbm %s2608_s0, 128  ;;  %s2164_s19 = scalar_lea.hbm %s2670_s14, 256 }
 0xa16   : > { %p2161_p6 = scmp.ne.s32.totalorder %s2608_s0, %s2160_s21  ;;  %p2165_p10 = scmp.lt.u32.totalorder %s2608_s0, %s2670_s14 }
 0xa17   : > { %p2166_p11 = scmp.lt.u32.totalorder %s2164_s19, %s2160_s21  ;;  %p2168_p13 = scmp.lt.u32.totalorder %s2160_s21, %s2608_s0 }
 0xa18   : > { %p2162_p7 = pnand %p2161_p6, %p2353_p4 }
 0xa19   : > { %p2167_p12 = por %p2166_p11, %p2165_p10 }
 0xa1a   : > { %p2163_p9 = pneg %p2162_p7 }
 0xa1b   : > { %p2169_p0 = por %p2168_p13, %p2167_p12 }
 0xa1d   : > { %p2170_p1 = pnand %p2169_p0, %p2163_p9 }
 0xa1f   : > { %2173 = shalt.err (!%p2170_p1)
}
 0xa20   : > { %2056 = dma.vmem_to_hbm [thread:$0]  (%p2353_p4), %s2610_s28, 128, %s2608_s0, %s1700_s2  }
 0xa21 PF: > { %p2062_p2 = scmp.ge.s32.totalorder %s2224_s18, 2  ;;  %s1726_s3 = sand.u32 1, %s2204_s29  }
 0xa22   : > { %s1727_s16 = scalar_lea.sflag [#allocation4], %s1726_s3 }
 0xa23   : > { %p2059_p3 = pnand %p2062_p2, %p2360_p8 }
 0xa25   : > { %2199 = dma.done.wait (!%p2059_p3), %s1727_s16, 128  }
 0xa26   : > { %2201 = vsyncadd (!%p2059_p3), %s1727_s16, 4294967168  ;;  %s27_s18 = sadd.s32 1, %s2224_s18   ;;  %s2683_s23 = sld [smem:[#allocation6_spill]] }
 0xa27   : > { %p24_p5 = scmp.ge.s32.totalorder %s27_s18, 4   ;;  %s2684_s29 = smov %s2208_s30 }
 0xa28   : > { %s2685_s30 = smov %s2212_s15  ;;  %s2686_s15 = smov %s2366_s26 }
 0xa29   : > { %s2687_s16 = smov %s2220_s17  ;;  %26 = sbr.rel (!%p24_p5) target bundleno = 9 (0x9), region = 119 }
 0xa2c   : > { %s2688_s17 = smov %s2683_s23 }
 0xa30   :  { %1732 = vsyncpa [#allocation4], 1 }
 0xa31   :  { %1734 = vsyncpa [#allocation4 + $0x1], 1 }

</bundles_post_ra>
